<compile_context>
chip_gen: v6e
topology: v6e:2x2x1
jax: 0.10.0
libtpu: 0.0.40
codegen_flags: <defaults>
</compile_context>

<pallas_src>
import math

import jax
import jax.numpy as jnp
from jax.experimental import pallas as pl
from jax.experimental.pallas import tpu as pltpu


# ---------------------------------------------------------------------------
# Helpers
# ---------------------------------------------------------------------------
def _round_up(v: int, m: int) -> int:
    return ((v + m - 1) // m) * m


def _round_down(v: int, m: int) -> int:
    return (v // m) * m


def _vmem_capacity_bytes() -> int:
    try:
        return int(pltpu.get_tpu_info().vmem_capacity_bytes)
    except Exception:
        return 64 * 2**20  # conservative: v7x per-TensorCore VMEM


# ---------------------------------------------------------------------------
# Buffer setup (plain JAX glue) — mirrors PositionalEncoding.__init__
# ---------------------------------------------------------------------------
def make_positional_encoding(d_model: int, max_len: int = 5000,
                             dtype=jnp.float32) -> jax.Array:
    """(max_len, 1, d_model) sinusoidal buffer (d_model even, as in PyTorch)."""
    position = jnp.arange(max_len, dtype=jnp.float32)[:, None]
    div_term = jnp.exp(
        jnp.arange(0, d_model, 2, dtype=jnp.float32) * (-math.log(10000.0) / d_model))
    angles = position * div_term
    pe = jnp.zeros((max_len, d_model), dtype=jnp.float32)
    pe = pe.at[:, 0::2].set(jnp.sin(angles))
    pe = pe.at[:, 1::2].set(jnp.cos(angles))
    return pe[:, None, :].astype(dtype)


# ---------------------------------------------------------------------------
# Pallas kernel: broadcast add over the batch (sublane) axis
# ---------------------------------------------------------------------------
def pe_add_kernel(x_ref, pe_ref, o_ref):
    # x_ref: (TS, B, TD); pe_ref: (TS, TD) -> broadcast over batch
    o_ref[...] = (x_ref[...] + pe_ref[...][:, None, :]).astype(o_ref.dtype)


def positional_encoding_forward(x: jax.Array, pe: jax.Array,
                                *, target_block_bytes: int | None = None,
                                donate_x: bool = False) -> jax.Array:
    """x: (S, B, D); pe: (max_len, 1, D) or (max_len, D). Returns x + pe[:S]."""
    S, B, D = x.shape
    max_len = pe.shape[0]
    assert pe.shape[-1] == D, "pe d_model mismatch"
    if S > max_len:
        raise ValueError(f"sequence length {S} exceeds pe max_len {max_len}")

    out_dtype = x.dtype                       # keep x's dtype end-to-end
    itemsize = jnp.dtype(out_dtype).itemsize
    sub_mult = max(1, 32 // (8 * itemsize)) * 8   # f32->8, bf16->16, int8->32

    vmem_cap = _vmem_capacity_bytes()
    if target_block_bytes is None:
        # ~8 MiB on v7x (64 MiB VMEM), ~16 MiB on v5e/v6e (128 MiB VMEM)
        target_block_bytes = int(max(4 * 2**20, min(16 * 2**20, vmem_cap // 8)))

    # pe as sublane-dense (max_len, D) in x's dtype (one-off tiny cast/reshape).
    pe2d = pe.reshape(max_len, D).astype(out_dtype)

    b_pad = _round_up(B, sub_mult)

    # ---- lane (D) tile: only tile when even a minimal (8, B, D) block exceeds
    # the budget and D is 128-aligned; otherwise take the full D.
    td = D
    if D % 128 == 0 and D > 128 and 8 * b_pad * D * itemsize > target_block_bytes:
        td = max(128, _round_down(target_block_bytes // (8 * b_pad * itemsize), 128))
        td = min(td, D)
    td_pad = _round_up(td, 128)
    row_bytes = b_pad * td_pad * itemsize     # padded bytes of one (1, B, td) slab

    # ---- sequence (S) tile
    if S >= 8:
        pe_in = pe2d
        ts_cap = _round_down(S, 8)            # keep ts a multiple of 8 and <= S
        ts = _round_down(max(8, target_block_bytes // max(1, row_bytes)), 8)
        ts = max(8, min(ts, ts_cap))
        # Guarantee >=2 grid steps (v7x 2-TC split) when the problem allows it.
        if S >= 16 and pl.cdiv(S, ts) * pl.cdiv(D, td) < 2:
            ts = max(8, _round_up(pl.cdiv(S, 2), 8))
    else:
        # Tiny sequence: single block; slice pe so block dims == array dims.
        ts = S
        pe_in = pe2d[:S]

    grid = (pl.cdiv(S, ts), pl.cdiv(D, td))

    # ---- VMEM budget from *padded* tile sizes, double-buffered, clamped to HW.
    ts_pad = _round_up(ts, sub_mult)
    x_blk = ts * b_pad * td_pad * itemsize
    o_blk = x_blk
    pe_blk = ts_pad * td_pad * itemsize
    vmem_need = 2 * (x_blk + o_blk + pe_blk)
    vmem_limit = int(min(int(0.8 * vmem_cap),
                         max(16 * 2**20, int(1.5 * vmem_need))))

    in_specs = [
        # Last two block dims are (B, td): B equals the full dim, td is either
        # the full D or a multiple of 128 -> layout-legal, lane-dense stores.
        pl.BlockSpec((ts, B, td), lambda i, j: (i, 0, j)),
        # pe sliced purely via its BlockSpec (no wrapper-side pe[:S] copy).
        pl.BlockSpec((ts, td), lambda i, j: (i, j)),
    ]
    out_specs = pl.BlockSpec((ts, B, td), lambda i, j: (i, 0, j))

    return pl.pallas_call(
        pe_add_kernel,
        out_shape=jax.ShapeDtypeStruct((S, B, D), out_dtype),
        grid=grid,
        in_specs=in_specs,
        out_specs=out_specs,
        input_output_aliases=({0: 0} if donate_x else {}),
        compiler_params=pltpu.CompilerParams(
            dimension_semantics=("parallel", "parallel"),
            vmem_limit_bytes=vmem_limit,
        ),
    )(x, pe_in)


# ---------------------------------------------------------------------------
# Reference (pure JAX)
# ---------------------------------------------------------------------------
def positional_encoding_ref(x: jax.Array, pe: jax.Array) -> jax.Array:
    return x + pe[: x.shape[0]].astype(x.dtype)


if __name__ == "__main__":
    key = jax.random.PRNGKey(0)

    # 1) Basic small case: x is (seq_len, batch, d_model).
    S, B, D = 8, 2, 32
    pe = make_positional_encoding(D, max_len=64)
    x = jax.random.normal(key, (S, B, D), dtype=jnp.float32)
    out = jax.block_until_ready(positional_encoding_forward(x, pe))
    ref = positional_encoding_ref(x, pe)
    assert out.shape == (S, B, D) and out.dtype == x.dtype
    assert jnp.allclose(out, ref, atol=1e-6, rtol=1e-6)

    # 2) Multi-step pipelined grid over S, S not divisible by the tile.
    x2 = jax.random.normal(jax.random.PRNGKey(1), (23, B, D), dtype=jnp.float32)
    out2 = jax.block_until_ready(
        positional_encoding_forward(x2, pe, target_block_bytes=2048))
    assert jnp.allclose(out2, positional_encoding_ref(x2, pe), atol=1e-6, rtol=1e-6)

    # 3) Tiny sequence (S < 8): single-block path with pre-sliced pe.
    x3 = jax.random.normal(jax.random.PRNGKey(2), (7, B, D), dtype=jnp.float32)
    out3 = jax.block_until_ready(positional_encoding_forward(x3, pe))
    assert jnp.allclose(out3, positional_encoding_ref(x3, pe), atol=1e-6, rtol=1e-6)

    # 4) D-tiling path (D multiple of 128, budget forces a 128-wide lane tile).
    S4, B4, D4 = 16, 2, 256
    pe4 = make_positional_encoding(D4, max_len=32)
    x4 = jax.random.normal(jax.random.PRNGKey(3), (S4, B4, D4), dtype=jnp.float32)
    out4 = jax.block_until_ready(
        positional_encoding_forward(x4, pe4, target_block_bytes=32768))
    assert jnp.allclose(out4, positional_encoding_ref(x4, pe4), atol=1e-6, rtol=1e-6)

    # 5) bf16 path: output stays bf16 (no f32 promotion of the write stream),
    #    and the >=2-grid-step split kicks in.
    S5, B5, D5 = 16, 2, 128
    pe5 = make_positional_encoding(D5, max_len=32)
    x5 = jax.random.normal(jax.random.PRNGKey(4), (S5, B5, D5)).astype(jnp.bfloat16)
    out5 = jax.block_until_ready(positional_encoding_forward(x5, pe5))
    assert out5.dtype == jnp.bfloat16
    ref5 = x5.astype(jnp.float32) + pe5[:S5, 0, :][:, None, :]
    assert jnp.allclose(out5.astype(jnp.float32), ref5, atol=6e-2, rtol=6e-2)

    # 6) Aliased output (output HBM buffer reuses x's when the caller donates x).
    out6 = jax.block_until_ready(positional_encoding_forward(x, pe, donate_x=True))
    assert jnp.allclose(out6, ref, atol=1e-6, rtol=1e-6)

    print("KERNEL_OK")
</pallas_src>

<mosaic_0001>
module attributes {stable_mosaic.version = 11 : i64} {
  func.func @pe_add_kernel(%arg0: i32, %arg1: i32, %arg2: memref<8x2x32xf32, #tpu.memory_space<vmem>>, %arg3: memref<8x32xf32, #tpu.memory_space<vmem>>, %arg4: memref<8x2x32xf32, #tpu.memory_space<vmem>>) attributes {dimension_semantics = [#tpu.dimension_semantics<parallel>, #tpu.dimension_semantics<parallel>], iteration_bounds = array<i64: 1, 1>, scalar_prefetch = 0 : i64, scratch_operands = 0 : i64, tpu.core_type = #tpu.core_type<tc>, window_params = [{transform_indices = @transform_0, window_bounds = array<i64: 8, 2, 32>}, {transform_indices = @transform_1, window_bounds = array<i64: 8, 32>}, {transform_indices = @transform_2, window_bounds = array<i64: 8, 2, 32>}]} {
    %c0 = arith.constant 0 : index
    %c0_0 = arith.constant 0 : index
    %c0_1 = arith.constant 0 : index
    %0 = vector.load %arg2[%c0, %c0_0, %c0_1] : memref<8x2x32xf32, #tpu.memory_space<vmem>>, vector<8x2x32xf32>
    %c0_2 = arith.constant 0 : index
    %c0_3 = arith.constant 0 : index
    %1 = vector.load %arg3[%c0_2, %c0_3] : memref<8x32xf32, #tpu.memory_space<vmem>>, vector<8x32xf32>
    %2 = vector.shape_cast %1 : vector<8x32xf32> to vector<8x1x32xf32>
    %3 = vector.broadcast %2 : vector<8x1x32xf32> to vector<8x2x32xf32>
    %4 = arith.addf %0, %3 : vector<8x2x32xf32>
    %c0_4 = arith.constant 0 : index
    %c0_5 = arith.constant 0 : index
    %c0_6 = arith.constant 0 : index
    %5 = vector.load %arg4[%c0_4, %c0_5, %c0_6] : memref<8x2x32xf32, #tpu.memory_space<vmem>>, vector<8x2x32xf32>
    tpu.vector_store %arg4[%c0_4, %c0_5, %c0_6], %4 {strides = array<i32>} : memref<8x2x32xf32, #tpu.memory_space<vmem>>, vector<8x2x32xf32>,
    return
  }
  func.func @transform_0(%arg0: i32, %arg1: i32) -> (i32, i32, i32) {
    %c0_i32 = arith.constant 0 : i32
    %c0_i32_0 = arith.constant 0 : i32
    return %arg0, %c0_i32, %arg1 : i32, i32, i32
  }
  func.func @transform_1(%arg0: i32, %arg1: i32) -> (i32, i32) {
    %c0_i32 = arith.constant 0 : i32
    return %arg0, %arg1 : i32, i32
  }
  func.func @transform_2(%arg0: i32, %arg1: i32) -> (i32, i32, i32) {
    %c0_i32 = arith.constant 0 : i32
    %c0_i32_0 = arith.constant 0 : i32
    return %arg0, %c0_i32, %arg1 : i32, i32, i32
  }
}

</mosaic_0001>

<bundles_post_ra>
// kernel: tpu_custom_call.1
= control target key start
LH: loop header
LB: loop body
LE: loop exit
PB: predicated region body
PF: predicated region fallthrough
CT: control target
= control target key end

     0   :  { %v26_v1 = vlaneseq  ;;  %v170_v2 = vmov 1966171168   ;;  %s227_s0 = inlined_call_operand.vmem [shape: f32[8,2,32], index: 0, kind: input, shape index: {}]   ;;  %s228_s1 = inlined_call_operand.vmem [shape: f32[64,32], index: 1, kind: input, shape index: {}]   ;;  %s229_s2 = inlined_call_operand.hbm [shape: f32[8,2,32], index: 2, kind: output, shape index: {}]  }
   0x1   :  { %v20_v0 = vld [vmem:[%s228_s1] sm:$0xff]  ;;  %v24_v3 = vunpack.c.l.s4 %v170_v2 }
   0x2   :  { %v27_v4 = vshrl.u32 %v26_v1, 7  ;;  %v22_v6 = vcombine.high %v20_v0, %v20_v0 }
   0x3   :  { %v25_v5 = vunpack.c.0.s8 %v24_v3 }
   0x4   :  { %7 = vsyncpa [#allocation3], 0  ;;  %v73_v9 = vsub.s32 0, %v27_v4  ;;  %v12_v15 = vld [vmem:[%s227_s0] sm:$0x3]  ;;  %vm119_vm0 = vcmask 254976  }
   0x5   :  { %v28_v7 = vsub.s32 %v25_v5, %v27_v4  ;;  %v16_v19 = vld [vmem:[%s227_s0 + $0x8] sm:$0x3]  ;;  %v13_v21 = vld [vmem:[%s227_s0 + $0x2] sm:$0x3]  ;;  %v14_v22 = vld [vmem:[%s227_s0 + $0x4] sm:$0x3] }
   0x6   :  { %v17_v29 = vld [vmem:[%s227_s0 + $0xa] sm:$0x3]  ;;  %v18_v30 = vld [vmem:[%s227_s0 + $0xc] sm:$0x3]  ;;  %v15_v31 = vld [vmem:[%s227_s0 + $0x6] sm:$0x3] }
   0x7   :  { %v29_v8 = vrot.slane %v20_v0, %v28_v7  ;;  %v36_v10 = vrot.slane %v22_v6, %v28_v7  ;;  %v19_v39 = vld [vmem:[%s227_s0 + $0xe] sm:$0x3]  ;;  %s171_s26 = smov [#allocation2]  }
   0x8   :  { %s133_s27 = sshll.u32 %s171_s26, 4  ;;  %s134_s27 = int_to_ptr.vmem [resolvable:$true] %s133_s27 }
   0x9   :  { %v45_v11 = vrot.slane %v29_v8, %v28_v7  ;;  %v37_v12 = vcombine.high %v29_v8, %v29_v8  ;;  %v52_v13 = vrot.slane %v36_v10, %v28_v7  ;;  %v38_v14 = vcombine.high %v36_v10, %v36_v10  ;;  %s148_s0 = scalar_lea.vmem %s134_s27, 256  ;;  %p153_p1 = scmp.lt.s32.totalorder %s134_s27, %s134_s27 }
   0xa   :  { %p149_p0 = scmp.ne.s32.totalorder %s134_s27, %s148_s0  ;;  %p154_p2 = scmp.lt.s32.totalorder %s148_s0, %s148_s0 }
   0xb   :  { %v74_v16 = vrot.slane %v45_v11, %v73_v9  ;;  %v59_v17 = vrot.slane %v37_v12, %v28_v7  ;;  %v67_v18 = vcombine.high %v45_v11, %v45_v11  ;;  %v90_v20 = vrot.slane %v52_v13, %v73_v9 }
   0xc   :  { %v66_v23 = vrot.slane %v38_v14, %v28_v7  ;;  %v68_v24 = vcombine.high %v52_v13, %v52_v13  ;;  %p155_p3 = por %p154_p2, %p153_p1 }
   0xd   :  { %v111_v25 = vadd.f32 %v74_v16, %v12_v15  ;;  %v78_v26 = vrot.slane %v59_v17, %v73_v9  ;;  %v82_v27 = vrot.slane %v67_v18, %v73_v9  ;;  %v69_v28 = vcombine.high %v59_v17, %v59_v17 }
   0xe   :  { %v115_v32 = vadd.f32 %v90_v20, %v16_v19  ;;  %v94_v33 = vrot.slane %v66_v23, %v73_v9  ;;  %v98_v34 = vrot.slane %v68_v24, %v73_v9  ;;  %v70_v35 = vcombine.high %v66_v23, %v66_v23  ;;  %p156_p4 = pnand %p155_p3, %p149_p0 }
   0xf   :  { %120 = vst.msk [vmem:[#allocation2] sm:$0x3] %vm119_vm0, %v111_v25  ;;  %v112_v36 = vadd.f32 %v78_v26, %v13_v21  ;;  %v113_v37 = vadd.f32 %v82_v27, %v14_v22  ;;  %v86_v38 = vrot.slane %v69_v28, %v73_v9 }
  0x10   :  { %124 = vst.msk [vmem:[#allocation2 + $0x8] sm:$0x3] %vm119_vm0, %v115_v32  ;;  %v116_v40 = vadd.f32 %v94_v33, %v17_v29  ;;  %v117_v41 = vadd.f32 %v98_v34, %v18_v30  ;;  %v102_v42 = vrot.slane %v70_v35, %v73_v9 }
  0x11   :  { %121 = vst.msk [vmem:[#allocation2 + $0x2] sm:$0x3] %vm119_vm0, %v112_v36  ;;  %122 = vst.msk [vmem:[#allocation2 + $0x4] sm:$0x3] %vm119_vm0, %v113_v37  ;;  %v114_v43 = vadd.f32 %v86_v38, %v15_v31 }
  0x12   :  { %125 = vst.msk [vmem:[#allocation2 + $0xa] sm:$0x3] %vm119_vm0, %v116_v40  ;;  %126 = vst.msk [vmem:[#allocation2 + $0xc] sm:$0x3] %vm119_vm0, %v117_v41  ;;  %v118_v44 = vadd.f32 %v102_v42, %v19_v39 }
  0x13   :  { %123 = vst.msk [vmem:[#allocation2 + $0x6] sm:$0x3] %vm119_vm0, %v114_v43 }
  0x14   :  { %127 = vst.msk [vmem:[#allocation2 + $0xe] sm:$0x3] %vm119_vm0, %v118_v44 }
  0x15   :  { %159 = shalt.err (!%p156_p4)
}
  0x16   :  { %s172_s28 = smov 32   ;;  %s173_s29 = smov 2  }
  0x17   :  { %139 = dma.vmem_to_hbm [thread:$0]  %s134_s27, 256, %s229_s2, [#allocation3], %s172_s28, %s172_s28, %s173_s29  }
  0x18   :  { %168 = dma.done.wait [#allocation3], 256  }
  0x19   :  { %169 = vsyncadd [#allocation3], 4294967040 }
  0x1a   :  { %143 = vsyncpa [#allocation3], 1 }

</bundles_post_ra>
